<compile_context>
chip_gen: v7x
topology: tpu7x:2x2x1
jax: 0.10.0
libtpu: 0.0.40
codegen_flags: <defaults>
</compile_context>

<pallas_src>
import functools

import jax
import jax.numpy as jnp
from jax import lax
from jax.experimental import pallas as pl
from jax.experimental.pallas import tpu as pltpu


def _round_up(x: int, m: int) -> int:
    return (x + m - 1) // m * m


# ---------------------------------------------------------------------------
# Kernel 1: two-layer MLP (Linear -> LeakyReLU -> Linear -> Tanh)
#   x: (tile_n, Cin), W1: (Cin, HP), W2: (HP, HP), biases (1, HP)
# ---------------------------------------------------------------------------
def _mlp_kernel(x_ref, w1_ref, b1_ref, w2_ref, b2_ref, o_ref):
    x = x_ref[...]                                                  # (tile_n, Cin)
    h = jnp.dot(x, w1_ref[...], preferred_element_type=jnp.float32) + b1_ref[...]
    h = jnp.where(h >= 0.0, h, 0.01 * h)                            # LeakyReLU(0.01)
    h2 = jnp.dot(h, w2_ref[...], preferred_element_type=jnp.float32) + b2_ref[...]
    o_ref[...] = jnp.tanh(h2)                                       # Tanh (EUP)


def mlp_forward(x, w1, b1, w2, b2, *, tile_n):
    n_pad, cin = x.shape
    hp = w1.shape[1]
    grid = (n_pad // tile_n,)
    return pl.pallas_call(
        _mlp_kernel,
        out_shape=jax.ShapeDtypeStruct((n_pad, hp), jnp.float32),
        grid_spec=pltpu.PrefetchScalarGridSpec(
            num_scalar_prefetch=0,
            grid=grid,
            in_specs=[
                pl.BlockSpec((tile_n, cin), lambda i: (i, 0)),
                pl.BlockSpec((cin, hp), lambda i: (0, 0)),
                pl.BlockSpec((1, hp), lambda i: (0, 0)),
                pl.BlockSpec((hp, hp), lambda i: (0, 0)),
                pl.BlockSpec((1, hp), lambda i: (0, 0)),
            ],
            out_specs=pl.BlockSpec((tile_n, hp), lambda i: (i, 0)),
        ),
        compiler_params=pltpu.CompilerParams(
            dimension_semantics=("parallel",)),
    )(x, w1, b1, w2, b2)


# ---------------------------------------------------------------------------
# Kernel 2: pairwise cosine similarity -> (1 + cos) / 2
#   Inputs are pre-gathered endpoint embeddings laid out edges-along-lanes:
#   a_t, b_t: (HP, E_pad).  Reduction over the feature axis (axis 0) yields
#   lane-dense (1, tile_e) scores -> unmasked stores / contiguous output DMA.
# ---------------------------------------------------------------------------
def _cos_kernel(at_ref, bt_ref, o_ref):
    a = at_ref[...]                                                 # (HP, tile_e)
    b = bt_ref[...]
    dot = jnp.sum(a * b, axis=0, keepdims=True)                     # (1, tile_e)
    na2 = jnp.sum(a * a, axis=0, keepdims=True)
    nb2 = jnp.sum(b * b, axis=0, keepdims=True)
    # torch: x.y / (max(|x|,1e-8) * max(|y|,1e-8))
    #      = x.y * rsqrt(max(|x|^2,1e-16) * max(|y|^2,1e-16))   (single EUP rsqrt)
    inv = lax.rsqrt(jnp.maximum(na2, 1e-16) * jnp.maximum(nb2, 1e-16))
    o_ref[...] = (1.0 + dot * inv) * 0.5


def edge_scores(a_t, b_t, *, tile_e):
    hp, e_pad = a_t.shape
    grid = (e_pad // tile_e,)
    return pl.pallas_call(
        _cos_kernel,
        out_shape=jax.ShapeDtypeStruct((1, e_pad), jnp.float32),
        grid_spec=pltpu.PrefetchScalarGridSpec(
            num_scalar_prefetch=0,
            grid=grid,
            in_specs=[
                pl.BlockSpec((hp, tile_e), lambda i: (0, i)),
                pl.BlockSpec((hp, tile_e), lambda i: (0, i)),
            ],
            out_specs=pl.BlockSpec((1, tile_e), lambda i: (0, i)),
        ),
        compiler_params=pltpu.CompilerParams(
            dimension_semantics=("parallel",)),
    )(a_t, b_t)


# ---------------------------------------------------------------------------
# Full EdgePredictor forward
#   Params stored as: w1 (Cin, hid), b1 (1, hid), w2 (hid, hid), b2 (1, hid)
#   (equivalent to PyTorch's x @ W^T + b with W of shape (out, in)).
# ---------------------------------------------------------------------------
@jax.jit
def edge_predictor_forward(x, edge_index, w1, b1, w2, b2):
    n, _cin = x.shape
    hid = w1.shape[1]
    e = edge_index.shape[1]

    # Tiling / padding decisions (all Python ints at trace time).
    hp = _round_up(hid, 128)                       # lane-aligned hidden dim
    tile_n = min(512, _round_up(n, 8))             # big node tiles
    n_pad = _round_up(n, tile_n)
    tile_e = min(1024, _round_up(e, 128))          # big, lane-aligned edge tiles
    e_pad = _round_up(e, tile_e)

    # Zero-pad: padded hidden channels are exactly 0 after both activations,
    # so the cosine similarity is unchanged.
    xp = jnp.pad(x.astype(jnp.float32), ((0, n_pad - n), (0, 0)))
    w1p = jnp.pad(w1, ((0, 0), (0, hp - hid)))
    b1p = jnp.pad(b1, ((0, 0), (0, hp - hid)))
    w2p = jnp.pad(w2, ((0, hp - hid), (0, hp - hid)))
    b2p = jnp.pad(b2, ((0, 0), (0, hp - hid)))

    h = mlp_forward(xp, w1p, b1p, w2p, b2p, tile_n=tile_n)          # (n_pad, hp)

    # Endpoint gather (XLA); padded edges reuse node 0 and are sliced away.
    src = jnp.pad(edge_index[0], (0, e_pad - e))
    dst = jnp.pad(edge_index[1], (0, e_pad - e))
    a_t = jnp.take(h, src, axis=0).T                                # (hp, e_pad)
    b_t = jnp.take(h, dst, axis=0).T

    scores = edge_scores(a_t, b_t, tile_e=tile_e)                   # (1, e_pad)
    return scores[0, :e]


def init_params(key, in_channels, hidden_channels):
    """Deterministic init mimicking nn.Linear (uniform +/- 1/sqrt(fan_in))."""
    k1, k2, k3, k4 = jax.random.split(key, 4)
    s1 = 1.0 / jnp.sqrt(in_channels)
    s2 = 1.0 / jnp.sqrt(hidden_channels)
    w1 = jax.random.uniform(k1, (in_channels, hidden_channels),
                            jnp.float32, -s1, s1)
    b1 = jax.random.uniform(k2, (1, hidden_channels), jnp.float32, -s1, s1)
    w2 = jax.random.uniform(k3, (hidden_channels, hidden_channels),
                            jnp.float32, -s2, s2)
    b2 = jax.random.uniform(k4, (1, hidden_channels), jnp.float32, -s2, s2)
    return w1, b1, w2, b2


def _reference(x, edge_index, w1, b1, w2, b2):
    """Pure-JAX reference (high-precision dots) mirroring the PyTorch module."""
    hi = jnp.dot(x, w1, precision=lax.Precision.HIGHEST) + b1
    h = jnp.where(hi >= 0.0, hi, 0.01 * hi)
    h = jnp.tanh(jnp.dot(h, w2, precision=lax.Precision.HIGHEST) + b2)
    a = h[edge_index[0]]
    b = h[edge_index[1]]
    na = jnp.maximum(jnp.sqrt(jnp.sum(a * a, axis=1)), 1e-8)
    nb = jnp.maximum(jnp.sqrt(jnp.sum(b * b, axis=1)), 1e-8)
    cos = jnp.sum(a * b, axis=1) / (na * nb)
    return (1.0 + cos) * 0.5


if __name__ == "__main__":
    key = jax.random.PRNGKey(0)
    kx, ke, kp = jax.random.split(key, 3)

    num_nodes = 16
    in_channels = 4
    hidden_channels = 32
    num_edges = 8

    x = jax.random.normal(kx, (num_nodes, in_channels), jnp.float32)
    edge_index = jax.random.randint(ke, (2, num_edges), 0, num_nodes, jnp.int32)
    w1, b1, w2, b2 = init_params(kp, in_channels, hidden_channels)

    res = edge_predictor_forward(x, edge_index, w1, b1, w2, b2)
    jax.block_until_ready(res)

    # sanity: shape, range, and agreement with a pure-JAX reference
    assert res.shape == (num_edges,)
    assert bool(jnp.all(res >= 0.0)) and bool(jnp.all(res <= 1.0))
    ref = _reference(x, edge_index, w1, b1, w2, b2)
    assert bool(jnp.allclose(res, ref, atol=5e-3, rtol=5e-3))

    print("KERNEL_OK")
</pallas_src>

<mosaic_0001>
module attributes {stable_mosaic.version = 11 : i64} {
  func.func @_mlp_kernel(%arg0: i32, %arg1: memref<16x4xf32, #tpu.memory_space<vmem>>, %arg2: memref<4x128xf32, #tpu.memory_space<vmem>>, %arg3: memref<1x128xf32, #tpu.memory_space<vmem>>, %arg4: memref<128x128xf32, #tpu.memory_space<vmem>>, %arg5: memref<1x128xf32, #tpu.memory_space<vmem>>, %arg6: memref<16x128xf32, #tpu.memory_space<vmem>>) attributes {dimension_semantics = [#tpu.dimension_semantics<parallel>], iteration_bounds = array<i64: 1>, scalar_prefetch = 0 : i64, scratch_operands = 0 : i64, tpu.core_type = #tpu.core_type<tc>, window_params = [{transform_indices = @transform_0, window_bounds = array<i64: 16, 4>}, {pipeline_mode = #tpu.pipeline_mode<synchronous>, transform_indices = @transform_1, window_bounds = array<i64: 4, 128>}, {pipeline_mode = #tpu.pipeline_mode<synchronous>, transform_indices = @transform_2, window_bounds = array<i64: 1, 128>}, {pipeline_mode = #tpu.pipeline_mode<synchronous>, transform_indices = @transform_3, window_bounds = array<i64: 128, 128>}, {pipeline_mode = #tpu.pipeline_mode<synchronous>, transform_indices = @transform_4, window_bounds = array<i64: 1, 128>}, {transform_indices = @transform_5, window_bounds = array<i64: 16, 128>}]} {
    %c0 = arith.constant 0 : index
    %c0_0 = arith.constant 0 : index
    %0 = vector.load %arg1[%c0, %c0_0] : memref<16x4xf32, #tpu.memory_space<vmem>>, vector<16x4xf32>
    %c0_1 = arith.constant 0 : index
    %c0_2 = arith.constant 0 : index
    %1 = vector.load %arg2[%c0_1, %c0_2] : memref<4x128xf32, #tpu.memory_space<vmem>>, vector<4x128xf32>
    %cst = arith.constant dense<0.000000e+00> : vector<16x128xf32>
    %2 = tpu.matmul %0, %1, %cst {dimension_numbers = #tpu.dot_dimension_numbers<[1], [0], [0], [1], [0, 0, 1, 1], [], []>} : vector<16x4xf32>, vector<4x128xf32>, vector<16x128xf32> -> vector<16x128xf32>
    %c0_3 = arith.constant 0 : index
    %c0_4 = arith.constant 0 : index
    %3 = vector.load %arg3[%c0_3, %c0_4] : memref<1x128xf32, #tpu.memory_space<vmem>>, vector<1x128xf32>
    %4 = vector.broadcast %3 : vector<1x128xf32> to vector<16x128xf32>
    %5 = arith.addf %2, %4 : vector<16x128xf32>
    %cst_5 = arith.constant 0.000000e+00 : f32
    %6 = vector.broadcast %cst_5 : f32 to vector<16x128xf32>
    %7 = arith.cmpf oge, %5, %6 : vector<16x128xf32>
    %cst_6 = arith.constant 0.00999999977 : f32
    %8 = vector.broadcast %cst_6 : f32 to vector<16x128xf32>
    %9 = arith.mulf %8, %5 : vector<16x128xf32>
    %10 = arith.select %7, %5, %9 : vector<16x128xi1>, vector<16x128xf32>
    %c0_7 = arith.constant 0 : index
    %c0_8 = arith.constant 0 : index
    %11 = vector.load %arg4[%c0_7, %c0_8] : memref<128x128xf32, #tpu.memory_space<vmem>>, vector<128x128xf32>
    %cst_9 = arith.constant dense<0.000000e+00> : vector<16x128xf32>
    %12 = tpu.matmul %10, %11, %cst_9 {dimension_numbers = #tpu.dot_dimension_numbers<[1], [0], [0], [1], [0, 0, 1, 1], [], []>} : vector<16x128xf32>, vector<128x128xf32>, vector<16x128xf32> -> vector<16x128xf32>
    %c0_10 = arith.constant 0 : index
    %c0_11 = arith.constant 0 : index
    %13 = vector.load %arg5[%c0_10, %c0_11] : memref<1x128xf32, #tpu.memory_space<vmem>>, vector<1x128xf32>
    %14 = vector.broadcast %13 : vector<1x128xf32> to vector<16x128xf32>
    %15 = arith.addf %12, %14 : vector<16x128xf32>
    %16 = math.tanh %15 : vector<16x128xf32>
    %c0_12 = arith.constant 0 : index
    %c0_13 = arith.constant 0 : index
    %17 = vector.load %arg6[%c0_12, %c0_13] : memref<16x128xf32, #tpu.memory_space<vmem>>, vector<16x128xf32>
    tpu.vector_store %arg6[%c0_12, %c0_13], %16 {strides = array<i32>} : memref<16x128xf32, #tpu.memory_space<vmem>>, vector<16x128xf32>,
    return
  }
  func.func @transform_0(%arg0: i32) -> (i32, i32) {
    %c0_i32 = arith.constant 0 : i32
    %c0_i32_0 = arith.constant 0 : i32
    return %arg0, %c0_i32 : i32, i32
  }
  func.func @transform_1(%arg0: i32) -> (i32, i32) {
    %c0_i32 = arith.constant 0 : i32
    %c0_i32_0 = arith.constant 0 : i32
    %c0_i32_1 = arith.constant 0 : i32
    return %c0_i32, %c0_i32_0 : i32, i32
  }
  func.func @transform_2(%arg0: i32) -> (i32, i32) {
    %c0_i32 = arith.constant 0 : i32
    %c0_i32_0 = arith.constant 0 : i32
    %c0_i32_1 = arith.constant 0 : i32
    return %c0_i32, %c0_i32_0 : i32, i32
  }
  func.func @transform_3(%arg0: i32) -> (i32, i32) {
    %c0_i32 = arith.constant 0 : i32
    %c0_i32_0 = arith.constant 0 : i32
    %c0_i32_1 = arith.constant 0 : i32
    return %c0_i32, %c0_i32_0 : i32, i32
  }
  func.func @transform_4(%arg0: i32) -> (i32, i32) {
    %c0_i32 = arith.constant 0 : i32
    %c0_i32_0 = arith.constant 0 : i32
    %c0_i32_1 = arith.constant 0 : i32
    return %c0_i32, %c0_i32_0 : i32, i32
  }
  func.func @transform_5(%arg0: i32) -> (i32, i32) {
    %c0_i32 = arith.constant 0 : i32
    %c0_i32_0 = arith.constant 0 : i32
    return %arg0, %c0_i32 : i32, i32
  }
}

module attributes {stable_mosaic.version = 11 : i64} {
  func.func @_cos_kernel(%arg0: i32, %arg1: memref<128x128xf32, #tpu.memory_space<vmem>>, %arg2: memref<128x128xf32, #tpu.memory_space<vmem>>, %arg3: memref<1x128xf32, #tpu.memory_space<vmem>>) attributes {dimension_semantics = [#tpu.dimension_semantics<parallel>], iteration_bounds = array<i64: 1>, scalar_prefetch = 0 : i64, scratch_operands = 0 : i64, tpu.core_type = #tpu.core_type<tc>, window_params = [{transform_indices = @transform_0, window_bounds = array<i64: 128, 128>}, {transform_indices = @transform_1, window_bounds = array<i64: 128, 128>}, {transform_indices = @transform_2, window_bounds = array<i64: 1, 128>}]} {
    %c0 = arith.constant 0 : index
    %c0_0 = arith.constant 0 : index
    %0 = vector.load %arg1[%c0, %c0_0] : memref<128x128xf32, #tpu.memory_space<vmem>>, vector<128x128xf32>
    %c0_1 = arith.constant 0 : index
    %c0_2 = arith.constant 0 : index
    %1 = vector.load %arg2[%c0_1, %c0_2] : memref<128x128xf32, #tpu.memory_space<vmem>>, vector<128x128xf32>
    %2 = arith.mulf %0, %1 : vector<128x128xf32>
    %cst = arith.constant dense<0.000000e+00> : vector<128xf32>
    %3 = vector.multi_reduction <add>, %2, %cst [0] : vector<128x128xf32> to vector<128xf32>
    %4 = vector.shape_cast %3 : vector<128xf32> to vector<1x128xf32>
    %5 = arith.mulf %0, %0 : vector<128x128xf32>
    %cst_3 = arith.constant dense<0.000000e+00> : vector<128xf32>
    %6 = vector.multi_reduction <add>, %5, %cst_3 [0] : vector<128x128xf32> to vector<128xf32>
    %7 = vector.shape_cast %6 : vector<128xf32> to vector<1x128xf32>
    %8 = arith.mulf %1, %1 : vector<128x128xf32>
    %cst_4 = arith.constant dense<0.000000e+00> : vector<128xf32>
    %9 = vector.multi_reduction <add>, %8, %cst_4 [0] : vector<128x128xf32> to vector<128xf32>
    %10 = vector.shape_cast %9 : vector<128xf32> to vector<1x128xf32>
    %cst_5 = arith.constant 1.000000e-16 : f32
    %11 = vector.broadcast %cst_5 : f32 to vector<1x128xf32>
    %12 = arith.maximumf %7, %11 : vector<1x128xf32>
    %cst_6 = arith.constant 1.000000e-16 : f32
    %13 = vector.broadcast %cst_6 : f32 to vector<1x128xf32>
    %14 = arith.maximumf %10, %13 : vector<1x128xf32>
    %15 = arith.mulf %12, %14 : vector<1x128xf32>
    %16 = math.rsqrt %15 : vector<1x128xf32>
    %17 = arith.mulf %4, %16 : vector<1x128xf32>
    %cst_7 = arith.constant 1.000000e+00 : f32
    %18 = vector.broadcast %cst_7 : f32 to vector<1x128xf32>
    %19 = arith.addf %18, %17 : vector<1x128xf32>
    %cst_8 = arith.constant 5.000000e-01 : f32
    %20 = vector.broadcast %cst_8 : f32 to vector<1x128xf32>
    %21 = arith.mulf %19, %20 : vector<1x128xf32>
    %c0_9 = arith.constant 0 : index
    %c0_10 = arith.constant 0 : index
    %22 = vector.load %arg3[%c0_9, %c0_10] : memref<1x128xf32, #tpu.memory_space<vmem>>, vector<1x128xf32>
    tpu.vector_store %arg3[%c0_9, %c0_10], %21 {strides = array<i32>} : memref<1x128xf32, #tpu.memory_space<vmem>>, vector<1x128xf32>,
    return
  }
  func.func @transform_0(%arg0: i32) -> (i32, i32) {
    %c0_i32 = arith.constant 0 : i32
    %c0_i32_0 = arith.constant 0 : i32
    return %c0_i32, %arg0 : i32, i32
  }
  func.func @transform_1(%arg0: i32) -> (i32, i32) {
    %c0_i32 = arith.constant 0 : i32
    %c0_i32_0 = arith.constant 0 : i32
    return %c0_i32, %arg0 : i32, i32
  }
  func.func @transform_2(%arg0: i32) -> (i32, i32) {
    %c0_i32 = arith.constant 0 : i32
    %c0_i32_0 = arith.constant 0 : i32
    return %c0_i32, %arg0 : i32, i32
  }
}

</mosaic_0001>

<bundles_post_ra>
// kernel: edge_predictor_forward.3
= control target key start
LH: loop header
LB: loop body
LE: loop exit
PB: predicated region body
PF: predicated region fallthrough
CT: control target
= control target key end

     0   :  { %s282_s0 = inlined_call_operand.vmem [shape: f32[128,128], index: 0, kind: input, shape index: {}]   ;;  %s283_s1 = inlined_call_operand.vmem [shape: f32[128,128], index: 1, kind: input, shape index: {}]   ;;  %s284_s2 = inlined_call_operand.vmem [shape: f32[1,128], index: 2, kind: output, shape index: {}]  }
   0x1   :  { %v11_v0 = vld [vmem:[%s282_s0] sm:$0xff]  ;;  %v12_v1 = vld [vmem:[%s282_s0 + $0x8] sm:$0xff]  ;;  %v13_v2 = vld [vmem:[%s282_s0 + $0x10] sm:$0xff] }
   0x2   :  { %v14_v3 = vld [vmem:[%s282_s0 + $0x18] sm:$0xff]  ;;  %v80_v4 = vmul.f32 %v11_v0, %v11_v0  ;;  %v81_v5 = vmul.f32 %v12_v1, %v12_v1  ;;  %v82_v6 = vmul.f32 %v13_v2, %v13_v2  ;;  %v15_v7 = vld [vmem:[%s282_s0 + $0x20] sm:$0xff]  ;;  %v16_v10 = vld [vmem:[%s282_s0 + $0x28] sm:$0xff] }
   0x3   :  { %v83_v8 = vmul.f32 %v14_v3, %v14_v3  ;;  %v27_v11 = vld [vmem:[%s283_s1] sm:$0xff]  ;;  %v28_v12 = vld [vmem:[%s283_s1 + $0x8] sm:$0xff]  ;;  %v84_v13 = vmul.f32 %v15_v7, %v15_v7  ;;  %v17_v15 = vld [vmem:[%s282_s0 + $0x30] sm:$0xff]  ;;  %v85_v21 = vmul.f32 %v16_v10, %v16_v10 }
   0x4   :  { %v96_v9 = vadd.f32 %v81_v5, %v80_v4  ;;  %v29_v16 = vld [vmem:[%s283_s1 + $0x10] sm:$0xff]  ;;  %v43_v17 = vmul.f32 %v27_v11, %v11_v0  ;;  %v44_v18 = vmul.f32 %v28_v12, %v12_v1  ;;  %v30_v19 = vld [vmem:[%s283_s1 + $0x18] sm:$0xff]  ;;  %v31_v26 = vld [vmem:[%s283_s1 + $0x20] sm:$0xff]  ;;  %v86_v27 = vmul.f32 %v17_v15, %v17_v15 }
   0x5   :  { %v45_v20 = vmul.f32 %v29_v16, %v13_v2  ;;  %v18_v23 = vld [vmem:[%s282_s0 + $0x38] sm:$0xff]  ;;  %v46_v24 = vmul.f32 %v30_v19, %v14_v3  ;;  %v19_v29 = vld [vmem:[%s282_s0 + $0x40] sm:$0xff]  ;;  %v47_v30 = vmul.f32 %v31_v26, %v15_v7  ;;  %v32_v32 = vld [vmem:[%s283_s1 + $0x28] sm:$0xff]  ;;  %v117_v38 = vmul.f32 %v27_v11, %v27_v11 }
   0x6   :  { %v97_v14 = vadd.f32 %v96_v9, %v82_v6  ;;  %v59_v25 = vadd.f32 %v44_v18, %v43_v17  ;;  %v87_v33 = vmul.f32 %v18_v23, %v18_v23  ;;  %v20_v35 = vld [vmem:[%s282_s0 + $0x48] sm:$0xff]  ;;  %v48_v36 = vmul.f32 %v32_v32, %v16_v10  ;;  %v33_v40 = vld [vmem:[%s283_s1 + $0x30] sm:$0xff]  ;;  %v34_v47 = vld [vmem:[%s283_s1 + $0x38] sm:$0xff] }
   0x7   :  { %v118_v39 = vmul.f32 %v28_v12, %v28_v12  ;;  %v88_v41 = vmul.f32 %v19_v29, %v19_v29  ;;  %v21_v43 = vld [vmem:[%s282_s0 + $0x50] sm:$0xff]  ;;  %v49_v44 = vmul.f32 %v33_v40, %v17_v15  ;;  %v119_v46 = vmul.f32 %v29_v16, %v29_v16  ;;  %v22_v50 = vld [vmem:[%s282_s0 + $0x58] sm:$0xff]  ;;  %v35_v55 = vld [vmem:[%s283_s1 + $0x40] sm:$0xff] }
   0x8   :  { %v98_v22 = vadd.f32 %v97_v14, %v83_v8  ;;  %v60_v31 = vadd.f32 %v59_v25, %v45_v20  ;;  %v89_v48 = vmul.f32 %v20_v35, %v20_v35  ;;  %v50_v51 = vmul.f32 %v34_v47, %v18_v23  ;;  %v23_v58 = vld [vmem:[%s282_s0 + $0x60] sm:$0xff]  ;;  %v36_v63 = vld [vmem:[%s283_s1 + $0x48] sm:$0xff]  ;;  %v37_v7 = vld [vmem:[%s283_s1 + $0x50] sm:$0xff] }
   0x9   :  { %v120_v53 = vmul.f32 %v30_v19, %v30_v19  ;;  %v133_v54 = vadd.f32 %v118_v39, %v117_v38  ;;  %v90_v56 = vmul.f32 %v21_v43, %v21_v43  ;;  %v51_v59 = vmul.f32 %v35_v55, %v19_v29  ;;  %v24_v2 = vld [vmem:[%s282_s0 + $0x68] sm:$0xff]  ;;  %v25_v10 = vld [vmem:[%s282_s0 + $0x70] sm:$0xff]  ;;  %v26_v17 = vld [vmem:[%s282_s0 + $0x78] sm:$0xff] }
   0xa   :  { %v99_v28 = vadd.f32 %v98_v22, %v84_v13  ;;  %v61_v37 = vadd.f32 %v60_v31, %v46_v24  ;;  %v121_v61 = vmul.f32 %v31_v26, %v31_v26  ;;  %v91_v0 = vmul.f32 %v22_v50, %v22_v50  ;;  %v38_v18 = vld [vmem:[%s283_s1 + $0x58] sm:$0xff]  ;;  %v40_v39 = vld [vmem:[%s283_s1 + $0x68] sm:$0xff] }
   0xb   :  { %v134_v62 = vadd.f32 %v133_v54, %v119_v46  ;;  %v52_v3 = vmul.f32 %v36_v63, %v20_v35  ;;  %v122_v5 = vmul.f32 %v32_v32, %v32_v32  ;;  %v92_v8 = vmul.f32 %v23_v58, %v23_v58 }
   0xc   :  { %v100_v34 = vadd.f32 %v99_v28, %v85_v21  ;;  %v62_v45 = vadd.f32 %v61_v37, %v47_v30  ;;  %v53_v11 = vmul.f32 %v37_v7, %v21_v43  ;;  %v123_v13 = vmul.f32 %v33_v40, %v33_v40  ;;  %v39_v30 = vld [vmem:[%s283_s1 + $0x60] sm:$0xff] }
   0xd   :  { %v135_v6 = vadd.f32 %v134_v62, %v120_v53  ;;  %v93_v15 = vmul.f32 %v24_v2, %v24_v2  ;;  %v124_v20 = vmul.f32 %v34_v47, %v34_v47  ;;  %v54_v22 = vmul.f32 %v38_v18, %v22_v50  ;;  %v41_v47 = vld [vmem:[%s283_s1 + $0x70] sm:$0xff] }
   0xe   :  { %v101_v42 = vadd.f32 %v100_v34, %v86_v27  ;;  %v63_v52 = vadd.f32 %v62_v45, %v48_v36  ;;  %v94_v23 = vmul.f32 %v25_v10, %v25_v10  ;;  %v125_v26 = vmul.f32 %v35_v55, %v35_v55 }
   0xf   :  { %v136_v14 = vadd.f32 %v135_v6, %v121_v61  ;;  %v95_v28 = vmul.f32 %v26_v17, %v26_v17  ;;  %v126_v31 = vmul.f32 %v36_v63, %v36_v63  ;;  %v127_v36 = vmul.f32 %v37_v7, %v37_v7 }
  0x10   :  { %v102_v49 = vadd.f32 %v101_v42, %v87_v33  ;;  %v64_v60 = vadd.f32 %v63_v52, %v49_v44  ;;  %v55_v33 = vmul.f32 %v39_v30, %v23_v58  ;;  %v128_v40 = vmul.f32 %v38_v18, %v38_v18 }
  0x11   :  { %v137_v21 = vadd.f32 %v136_v14, %v122_v5  ;;  %v56_v42 = vmul.f32 %v40_v39, %v24_v2  ;;  %v129_v45 = vmul.f32 %v39_v30, %v39_v30  ;;  %v57_v52 = vmul.f32 %v41_v47, %v25_v10 }
  0x12   :  { %v103_v57 = vadd.f32 %v102_v49, %v88_v41  ;;  %v65_v4 = vadd.f32 %v64_v60, %v50_v51  ;;  %v130_v49 = vmul.f32 %v40_v39, %v40_v39  ;;  %v42_v51 = vld [vmem:[%s283_s1 + $0x78] sm:$0xff]  ;;  %v131_v54 = vmul.f32 %v41_v47, %v41_v47 }
  0x13   :  { %v138_v27 = vadd.f32 %v137_v21, %v123_v13 }
  0x14   :  { %v104_v1 = vadd.f32 %v103_v57, %v89_v48  ;;  %v66_v12 = vadd.f32 %v65_v4, %v51_v59  ;;  %v132_v57 = vmul.f32 %v42_v51, %v42_v51  ;;  %v58_v59 = vmul.f32 %v42_v51, %v26_v17 }
  0x15   :  { %v139_v32 = vadd.f32 %v138_v27, %v124_v20 }
  0x16   :  { %v105_v9 = vadd.f32 %v104_v1, %v90_v56  ;;  %v67_v19 = vadd.f32 %v66_v12, %v52_v3 }
  0x17   :  { %v140_v37 = vadd.f32 %v139_v32, %v125_v26 }
  0x18   :  { %v106_v16 = vadd.f32 %v105_v9, %v91_v0  ;;  %v68_v25 = vadd.f32 %v67_v19, %v53_v11 }
  0x19   :  { %v141_v41 = vadd.f32 %v140_v37, %v126_v31 }
  0x1a   :  { %v107_v24 = vadd.f32 %v106_v16, %v92_v8  ;;  %v69_v34 = vadd.f32 %v68_v25, %v54_v22 }
  0x1b   :  { %v142_v46 = vadd.f32 %v141_v41, %v127_v36 }
  0x1c   :  { %v108_v29 = vadd.f32 %v107_v24, %v93_v15  ;;  %v70_v43 = vadd.f32 %v69_v34, %v55_v33 }
  0x1d   :  { %v143_v50 = vadd.f32 %v142_v46, %v128_v40 }
  0x1e   :  { %v109_v35 = vadd.f32 %v108_v29, %v94_v23  ;;  %v71_v53 = vadd.f32 %v70_v43, %v56_v42 }
  0x1f   :  { %v144_v55 = vadd.f32 %v143_v50, %v129_v45 }
  0x20   :  { %v110_v38 = vadd.f32 %v109_v35, %v95_v28  ;;  %v72_v60 = vadd.f32 %v71_v53, %v57_v52 }
  0x21   :  { %v145_v58 = vadd.f32 %v144_v55, %v130_v49 }
  0x22   :  { %v111_v44 = vrot.slane %v110_v38, 4  ;;  %v73_v0 = vadd.f32 %v72_v60, %v58_v59 }
  0x23   :  { %v146_v61 = vadd.f32 %v145_v58, %v131_v54 }
  0x24   :  { %v112_v48 = vadd.f32 %v111_v44, %v110_v38  ;;  %v74_v4 = vrot.slane %v73_v0, 4 }
  0x25   :  { %v147_v63 = vadd.f32 %v146_v61, %v132_v57 }
  0x26   :  { %v113_v56 = vrot.slane %v112_v48, 2  ;;  %v75_v8 = vadd.f32 %v74_v4, %v73_v0 }
  0x27   :  { %v148_v1 = vrot.slane %v147_v63, 4 }
  0x28   :  { %v114_v62 = vadd.f32 %v113_v56, %v112_v48  ;;  %v76_v12 = vrot.slane %v75_v8, 2 }
  0x29   :  { %v149_v3 = vadd.f32 %v148_v1, %v147_v63 }
  0x2a   :  { %v115_v2 = vrot.slane %v114_v62, 1  ;;  %v77_v15 = vadd.f32 %v76_v12, %v75_v8 }
  0x2b   :  { %v150_v5 = vrot.slane %v149_v3, 2 }
  0x2c   :  { %v116_v6 = vadd.f32 %v115_v2, %v114_v62  ;;  %v78_v16 = vrot.slane %v77_v15, 1 }
  0x2d   :  { %v151_v7 = vadd.f32 %v150_v5, %v149_v3 }
  0x2e   :  { %v154_v11 = vmax.f32 %v116_v6, 1e-16  ;;  %v79_v17 = vadd.f32 %v78_v16, %v77_v15 }
  0x2f   :  { %v152_v9 = vrot.slane %v151_v7, 1 }
  0x31   :  { %v153_v10 = vadd.f32 %v152_v9, %v151_v7 }
  0x33   :  { %v155_v13 = vmax.f32 %v153_v10, 1e-16 }
  0x35   :  { %v156_v14 = vmul.f32 %v155_v13, %v154_v11 }
  0x37   :  { %166 = vrsqrt.f32 %v156_v14 }
  0x41   :  { %v167_v18 = vpop.eup %166 }
  0x42   :  { %v158_v19 = vmul.f32 %v167_v18, %v79_v17 }
  0x44   :  { %v159_v20 = vadd.f32 1.0, %v158_v19 }
  0x46   :  { %v160_v21 = vmul.f32 0.5, %v159_v20 }
  0x48   :  { %161 = vst [vmem:[%s284_s2] sm:$0x1] %v160_v21 }

// kernel: edge_predictor_forward.2
= control target key start
LH: loop header
LB: loop body
LE: loop exit
PB: predicated region body
PF: predicated region fallthrough
CT: control target
= control target key end

     0   :  { %vm37_vm0 = vcmask 1043456   ;;  %vm30_vm1 = vcmask 31744   ;;  %s429_s1 = inlined_call_operand.vmem [shape: f32[4,128], index: 1, kind: input, shape index: {}]   ;;  %s430_s0 = inlined_call_operand.vmem [shape: f32[16,4], index: 0, kind: input, shape index: {}]   ;;  %s431_s3 = inlined_call_operand.vmem [shape: f32[128,128], index: 3, kind: input, shape index: {}]   ;;  %s432_s2 = inlined_call_operand.vmem [shape: f32[1,128], index: 2, kind: input, shape index: {}]   ;;  %s433_s4 = inlined_call_operand.vmem [shape: f32[1,128], index: 4, kind: input, shape index: {}]   ;;  %s434_s5 = inlined_call_operand.vmem [shape: f32[16,128], index: 5, kind: output, shape index: {}]  }
   0x1   :  { %v22_v0 = vld [vmem:[%s429_s1] sm:$0xf]  ;;  %v21_v2 = vld [vmem:[%s430_s0 + $0x8] sm:$0xff]  ;;  %v124_v5 = vld [vmem:[%s431_s3 + $0x10] sm:$0xff] }
   0x2   :  { %v20_v1 = vld [vmem:[%s430_s0] sm:$0xff]  ;;  %254 = vmatprep.subr.msk.mxu0 %vm37_vm0, %v22_v0  ;;  %v123_v4 = vld [vmem:[%s431_s3 + $0x8] sm:$0xff]  ;;  %v125_v7 = vld [vmem:[%s431_s3 + $0x18] sm:$0xff] }
   0x3   :  { %256 = vmatprep.mubr.msk.f32.mxu0 %vm30_vm1, %v20_v1  ;;  %v122_v3 = vld [vmem:[%s431_s3] sm:$0xff]  ;;  %255 = vmatpush3.msk.msra.mxu0 %vm37_vm0, %v22_v0  ;;  %v298_v8 = vpack.c.bf16 %v125_v7, %v124_v5  ;;  %v127_v10 = vld [vmem:[%s431_s3 + $0x28] sm:$0xff]  ;;  %v128_v12 = vld [vmem:[%s431_s3 + $0x30] sm:$0xff] }
   0x4   :  { %v294_v6 = vpack.c.bf16 %v123_v4, %v122_v3  ;;  %257 = vmatmul.mubr.msk.f32.vlgmr.msra.gmra.mrb[0].mxu0 %vm30_vm1, %v21_v2  ;;  %v126_v9 = vld [vmem:[%s431_s3 + $0x20] sm:$0xff]  ;;  %v129_v13 = vld [vmem:[%s431_s3 + $0x38] sm:$0xff]  ;;  %v131_v16 = vld [vmem:[%s431_s3 + $0x48] sm:$0xff] }
   0x5   :  { %v302_v11 = vpack.c.bf16 %v127_v10, %v126_v9  ;;  %v306_v14 = vpack.c.bf16 %v129_v13, %v128_v12  ;;  %v130_v15 = vld [vmem:[%s431_s3 + $0x40] sm:$0xff]  ;;  %v132_v18 = vld [vmem:[%s431_s3 + $0x50] sm:$0xff]  ;;  %v133_v19 = vld [vmem:[%s431_s3 + $0x58] sm:$0xff] }
   0x6   :  { %295 = vmatprep.subr.bf16.mxu1 %v294_v6  ;;  %v310_v17 = vpack.c.bf16 %v131_v16, %v130_v15  ;;  %v314_v20 = vpack.c.bf16 %v133_v19, %v132_v18  ;;  %v134_v21 = vld [vmem:[%s431_s3 + $0x60] sm:$0xff]  ;;  %v135_v22 = vld [vmem:[%s431_s3 + $0x68] sm:$0xff]  ;;  %v136_v24 = vld [vmem:[%s431_s3 + $0x70] sm:$0xff] }
   0x7   :  { %297 = vmatpush3.bf16.msra.mxu1 %v294_v6  ;;  %v318_v23 = vpack.c.bf16 %v135_v22, %v134_v21  ;;  %v137_v25 = vld [vmem:[%s431_s3 + $0x78] sm:$0xff]  ;;  %v228_v27 = vld [vmem:[%s432_s2] ss:$0 sm:$0xff] }
   0x8   :  { %299 = vmatprep.subr.bf16.mxu1 %v298_v8  ;;  %v322_v26 = vpack.c.bf16 %v137_v25, %v136_v24  ;;  %v232_v36 = vld [vmem:[%s433_s4] ss:$0 sm:$0xff] }
   0xb   :  { %301 = vmatpush3.bf16.msra.mxu1 %v298_v8 }
   0xc   :  { %303 = vmatprep.subr.bf16.mxu1 %v302_v11 }
   0xf   :  { %305 = vmatpush3.bf16.msra.mxu1 %v302_v11 }
  0x10   :  { %307 = vmatprep.subr.bf16.mxu1 %v306_v14 }
  0x13   :  { %309 = vmatpush3.bf16.msra.mxu1 %v306_v14 }
  0x14   :  { %311 = vmatprep.subr.bf16.mxu1 %v310_v17 }
  0x17   :  { %313 = vmatpush3.bf16.msra.mxu1 %v310_v17 }
  0x18   :  { %315 = vmatprep.subr.bf16.mxu1 %v314_v20 }
  0x1b   :  { %317 = vmatpush3.bf16.msra.mxu1 %v314_v20 }
  0x1c   :  { %319 = vmatprep.subr.bf16.mxu1 %v318_v23 }
  0x1f   :  { %321 = vmatpush3.bf16.msra.mxu1 %v318_v23 }
  0x20   :  { %323 = vmatprep.subr.bf16.mxu1 %v322_v26 }
  0x23   :  { %325 = vmatpush3.bf16.msra.mxu1 %v322_v26 }
  0xd7   :  { %v258_v28 = vpop.f32.mrb[0].mxu0 }
  0xd8   :  { %v113_v29 = vadd.f32 %v258_v28, %v228_v27  ;;  %v107_v30 = vpop.f32.mrb[1].mxu0 }
  0xd9   :  { %v108_v31 = vadd.f32 %v228_v27, %v107_v30 }
  0xda   :  { %v119_v32 = vmul.f32 0.01, %v113_v29  ;;  %vm117_vm3 = vcmp.ge.f32.partialorder %v113_v29, 0.0 }
  0xdb   :  { %vm116_vm2 = vcmp.ge.f32.partialorder %v108_v31, 0.0  ;;  %v118_v33 = vmul.f32 0.01, %v108_v31 }
  0xdc   :  { %v121_v35 = vsel %vm117_vm3, %v113_v29, %v119_v32 }
  0xdd   :  { %v120_v34 = vsel %vm116_vm2, %v108_v31, %v118_v33 }
  0xde   :  { %291 = vmatprep.mubr.f32.mxu1 %v120_v34 }
  0xdf   :  { %292 = vmatmul.mubr.f32.vlgmr.msra.gmra.mrb[0].mxu1 %v121_v35 }
 0x1b2   :  { %v293_v37 = vpop.f32.mrb[0].mxu1 }
 0x1b3   :  { %v217_v38 = vadd.f32 %v293_v37, %v232_v36  ;;  %v211_v39 = vpop.f32.mrb[1].mxu1 }
 0x1b4   :  { %v212_v40 = vadd.f32 %v232_v36, %v211_v39 }
 0x1b5   :  { %326 = vtanh.f32 %v217_v38 }
 0x1b6   :  { %328 = vtanh.f32 %v212_v40 }
 0x1bf   :  { %v327_v41 = vpop.eup %326 }
 0x1c0   :  { %v329_v42 = vpop.eup %328  ;;  %223 = vst [vmem:[%s434_s5 + $0x8] sm:$0xff] %v327_v41 }
 0x1c1   :  { %222 = vst [vmem:[%s434_s5] sm:$0xff] %v329_v42 }

</bundles_post_ra>
